<compile_context>
chip_gen: v6e
topology: v6e:2x2x1
jax: 0.10.0
libtpu: 0.0.40
codegen_flags: <defaults>
</compile_context>

<pallas_src>
import functools

import numpy as np

import jax
import jax.numpy as jnp
from jax.experimental import pallas as pl
from jax.experimental.pallas import tpu as pltpu


def _round_up(a, b):
    return (a + b - 1) // b * b


def _cdiv(a, b):
    return (a + b - 1) // b


def _erode_kernel(*refs, H, W, K, taps, thr, acc_dtype, separable, lane_batch):
    """One grid step of the erosion.

    Refs (in order):
      [scal_ref]  SMEM (K*K+1,) f32   -- only when the structuring element is traced
      x_ref       VMEM input block    -- (H, W, L) if lane_batch else (TB, H, W)
      o_ref       VMEM int32 output block, same layout as x_ref
      xp_ref      VMEM padded scratch -- (Hp, Wp, L) / (TB, Hp, Wp), dtype acc_dtype
      [row_ref]   VMEM row scratch    -- only for the separable all-ones fast path
    """
    use_smem = taps is None
    if use_smem:
        scal_ref, refs = refs[0], refs[1:]
    else:
        scal_ref = None
    x_ref, o_ref, xp_ref = refs[0], refs[1], refs[2]
    row_ref = refs[3] if separable else None

    pad = (K - 1) // 2
    Hp, Wp = H + 2 * pad, W + 2 * pad

    # ---- fused cast + zero-pad into the persistent VMEM scratch -------------------
    x = x_ref[...].astype(jnp.float32)
    if acc_dtype != jnp.float32:
        x = x.astype(acc_dtype)

    if pad == 0:
        xp_ref[...] = x
    elif lane_batch:
        # Layout (Hp, Wp, L): the lane axis is the batch, so every store below is
        # full-lane-width (no masked vst); halo offsets only touch sublanes.
        L = x.shape[-1]
        xp_ref[pad:pad + H, pad:pad + W, :] = x
        zc = jnp.zeros((Hp, pad, L), acc_dtype)
        xp_ref[:, 0:pad, :] = zc
        xp_ref[:, pad + W:Wp, :] = zc
        zr = jnp.zeros((pad, Wp, L), acc_dtype)
        xp_ref[0:pad, :, :] = zr
        xp_ref[pad + H:Hp, :, :] = zr
    else:
        # Layout (TB, Hp, Wp): W (a multiple of 128) is the lane axis; the column halo
        # is <= 2*pad lanes of Wp, a tiny fraction of this path's store traffic.
        TB = x.shape[0]
        zr = jnp.zeros((TB, pad, Wp), acc_dtype)
        xp_ref[:, 0:pad, :] = zr
        xp_ref[:, pad + H:Hp, :] = zr
        zc = jnp.zeros((TB, Hp, pad), acc_dtype)
        xp_ref[:, :, 0:pad] = zc
        xp_ref[:, :, pad + W:Wp] = zc
        xp_ref[:, pad:pad + H, pad:pad + W] = x

    # ---- shifted-window correlation on REF slices (static offsets fold into loads) ----
    if lane_batch:
        def win(ki, kj, h):
            return xp_ref[ki:ki + h, kj:kj + W, :]

        def row_win(ki):
            return row_ref[ki:ki + H, :, :]
    else:
        def win(ki, kj, h):
            return xp_ref[:, ki:ki + h, kj:kj + W]

        def row_win(ki):
            return row_ref[:, ki:ki + H, :]

    if separable:
        # All-ones structuring element: separable row-then-column sum,
        # 2*(K-1) adds/pixel, row intermediate parked in a small VMEM scratch.
        row = win(0, 0, Hp)
        for kj in range(1, K):
            row = row + win(0, kj, Hp)
        row_ref[...] = row
        acc = row_win(0)
        for ki in range(1, K):
            acc = acc + row_win(ki)
    elif not use_smem:
        # Concrete taps baked in at trace time: zeros skipped entirely, unit taps
        # are plain adds, only true float weights pay a vector multiply.
        acc = None
        for ki in range(K):
            for kj in range(K):
                t = taps[ki * K + kj]
                if t == 0.0:
                    continue
                w = win(ki, kj, H)
                term = w if t == 1.0 else w * t
                acc = term if acc is None else acc + term
        if acc is None:  # all-zero structuring element: conv == 0 >= 0 -> all ones
            acc = jnp.zeros(o_ref.shape, acc_dtype)
    else:
        # Traced structuring element: taps + threshold live in SMEM.
        acc = win(0, 0, H) * scal_ref[0]
        for ki in range(K):
            for kj in range(K):
                if ki == 0 and kj == 0:
                    continue
                acc = acc + win(ki, kj, H) * scal_ref[ki * K + kj]

    thr_v = scal_ref[K * K] if use_smem else jnp.asarray(thr, dtype=acc.dtype)
    o_ref[...] = (acc >= thr_v).astype(jnp.int32)


def erode_generation_pallas(inp, kernel, *, vmem_limit_bytes=None):
    """Pallas TPU equivalent of erode_generation.forward(input, kernel).

    inp:    (N, 1, H, W) numeric (float / bool / int) array.
    kernel: (K, K) structuring element, K odd.
    Returns int32 (N, 1, H, W).
    """
    N, C, H, W = inp.shape
    assert C == 1, "conv weight is (1,1,K,K) -> input must have a single channel"
    K, K2 = kernel.shape
    assert K == K2, "structuring element must be square"
    assert K % 2 == 1, "only odd kernel sizes preserve the spatial shape"
    pad = (K - 1) // 2
    Hp, Wp = H + 2 * pad, W + 2 * pad
    B = N * C

    x = inp.reshape(B, H, W)
    is_bool = (x.dtype == jnp.bool_)
    if is_bool:
        x = x.astype(jnp.int8)  # narrow, Pallas-friendly representation

    # -- trace-time specialization of the structuring element (concrete kernels only) --
    taps = thr = None
    try:
        k_np = np.asarray(jax.device_get(kernel), dtype=np.float32)
        taps = tuple(float(v) for v in k_np.reshape(-1))
        thr = float(k_np.sum(dtype=np.float32))
    except Exception:  # traced kernel (e.g. under jit) -> SMEM-taps fallback
        taps = thr = None
    separable = (taps is not None) and K > 1 and all(t == 1.0 for t in taps)

    # bf16 accumulation is exact for 0/1 inputs when the integer sum fits in 256.
    acc_dtype = jnp.bfloat16 if (separable and is_bool and K * K <= 256) else jnp.float32
    acc_bytes = jnp.dtype(acc_dtype).itemsize
    in_bytes = x.dtype.itemsize

    scal = None
    if taps is None:
        kern_f32 = kernel.astype(jnp.float32)
        scal = jnp.concatenate([kern_f32.reshape(-1), jnp.sum(kern_f32).reshape(1)])

    # -- VMEM budget (re-derived per chip: v7x has only 64 MiB physical VMEM) --
    if vmem_limit_bytes is None:
        try:
            cap = int(pltpu.get_tpu_info().vmem_capacity_bytes)
        except Exception:
            cap = 64 * 1024 * 1024  # conservative fallback (v7x physical)
        vmem_limit_bytes = min(cap * 3 // 4, 96 * 1024 * 1024)
    vmem_limit_bytes = int(vmem_limit_bytes)

    # Per-image / per-lane footprint: double-buffered input + int32 output blocks,
    # persistent padded scratch, optional row scratch, acc + one live window.
    per_unit = (H * W * (2 * in_bytes + 2 * 4)
                + Hp * Wp * acc_bytes
                + (Hp * W * acc_bytes if separable else 0)
                + 2 * H * W * acc_bytes)

    lane_batch = (W % 128 != 0)  # W not lane-dense -> put the batch on the lane axis
    min_unit = 128 if lane_batch else 1

    if per_unit * min_unit > int(0.8 * vmem_limit_bytes):
        # TODO(synk): halo-row spatial tiling over H for images whose single-block
        #             footprint exceeds the VMEM budget (matters most on v7x/64 MiB).
        vmem_limit_bytes = min(max(vmem_limit_bytes, int(per_unit * min_unit * 1.25)),
                               127 * 1024 * 1024)
    budget = max(int(0.8 * vmem_limit_bytes), per_unit * min_unit)

    if lane_batch:
        # Layout (H, W, L): batch on lanes, L a multiple of 128 -> lane-dense I/O.
        L_total = _round_up(B, 128)
        L = max(128, (budget // per_unit) // 128 * 128)
        L = min(L, L_total)
        steps = _cdiv(L_total, L)
        if steps > 1 and steps % 2 == 1:  # best-effort balance over v7x's 2 TensorCores
            L2 = _round_up(_cdiv(L_total, steps + 1), 128)
            if 128 <= L2 <= L:
                L, steps = L2, _cdiv(L_total, L2)
        Bp = steps * L
        arr = jnp.transpose(x, (1, 2, 0))  # wrapper-side layout plumbing
        if Bp != B:
            arr = jnp.pad(arr, ((0, 0), (0, 0), (0, Bp - B)))
        block = (H, W, L)
        idx = lambda b: (0, 0, b)
        out_shape = jax.ShapeDtypeStruct((H, W, Bp), jnp.int32)
        scratch = [pltpu.VMEM((Hp, Wp, L), acc_dtype)]
        if separable:
            scratch.append(pltpu.VMEM((Hp, W, L), acc_dtype))
    else:
        # Layout (TB, H, W): W already a multiple of 128 -> stay image-major.
        TB = min(max(1, budget // per_unit), B)
        steps = _cdiv(B, TB)
        if steps > 1 and steps % 2 == 1:  # best-effort balance over v7x's 2 TensorCores
            TB2 = _cdiv(B, steps + 1)
            if 1 <= TB2 <= TB:
                TB, steps = TB2, _cdiv(B, TB2)
        Bp = steps * TB
        arr = x if Bp == B else jnp.pad(x, ((0, Bp - B), (0, 0), (0, 0)))
        block = (TB, H, W)
        idx = lambda b: (b, 0, 0)
        out_shape = jax.ShapeDtypeStruct((Bp, H, W), jnp.int32)
        scratch = [pltpu.VMEM((TB, Hp, Wp), acc_dtype)]
        if separable:
            scratch.append(pltpu.VMEM((TB, Hp, W), acc_dtype))

    in_specs = [pl.BlockSpec(block, idx)]
    call_args = (arr,)
    if taps is None:
        in_specs = [pl.BlockSpec(memory_space=pltpu.MemorySpace.SMEM)] + in_specs
        call_args = (scal, arr)

    out = pl.pallas_call(
        functools.partial(_erode_kernel, H=H, W=W, K=K, taps=taps, thr=thr,
                          acc_dtype=acc_dtype, separable=separable,
                          lane_batch=lane_batch),
        out_shape=out_shape,
        grid_spec=pltpu.PrefetchScalarGridSpec(
            num_scalar_prefetch=0,
            grid=(steps,),
            in_specs=in_specs,
            out_specs=pl.BlockSpec(block, idx),
            scratch_shapes=scratch,
        ),
        compiler_params=pltpu.CompilerParams(
            dimension_semantics=("parallel",),
            vmem_limit_bytes=vmem_limit_bytes,
        ),
    )(*call_args)

    if lane_batch:
        out = jnp.transpose(out, (2, 0, 1))  # back to (Bp, H, W)
    return out[:B].reshape(N, C, H, W)


def _reference(inp, kernel):
    """Pure-JAX reference: conv2d(input.float(), kernel, pad=(K-1)//2) >= sum(kernel)."""
    Kk = kernel.shape[0]
    p = (Kk - 1) // 2
    x = inp[:, 0].astype(jnp.float32)
    xp = jnp.pad(x, ((0, 0), (p, p), (p, p)))
    res = jnp.zeros_like(x)
    for ki in range(Kk):
        for kj in range(Kk):
            res = res + xp[:, ki:ki + x.shape[1], kj:kj + x.shape[2]] * \
                kernel[ki, kj].astype(jnp.float32)
    return (res >= jnp.sum(kernel.astype(jnp.float32))).astype(jnp.int32)[:, None]


if __name__ == "__main__":
    key = jax.random.PRNGKey(0)
    k1, k2, k3 = jax.random.split(key, 3)

    N, C, H, W = 2, 1, 16, 16
    K = 3
    inp = (jax.random.uniform(k1, (N, C, H, W)) > 0.3).astype(jnp.float32)

    kernel_ones = jnp.ones((K, K), jnp.float32)
    kernel_cross = jnp.array([[0., 1., 0.], [1., 1., 1.], [0., 1., 0.]], jnp.float32)
    kernel_gen = jnp.arange(1, K * K + 1, dtype=jnp.float32).reshape(K, K)

    # 1) all-ones kernel: separable fast path, batch-on-lanes layout (W=16 < 128)
    out = erode_generation_pallas(inp, kernel_ones)
    jax.block_until_ready(out)
    assert out.dtype == jnp.int32 and out.shape == (N, C, H, W)
    assert bool(jnp.all(out == _reference(inp, kernel_ones)))

    # 2) sparse 0/1 cross: static-tap path (zeros skipped, ones are plain adds)
    out = erode_generation_pallas(inp, kernel_cross)
    assert bool(jnp.all(out == _reference(inp, kernel_cross)))

    # 3) general weighted taps: static mul-add path
    out = erode_generation_pallas(inp, kernel_gen)
    assert bool(jnp.all(out == _reference(inp, kernel_gen)))

    # 4) traced structuring element (under jit): SMEM-taps fallback path
    out = jax.jit(erode_generation_pallas)(inp, kernel_gen)
    jax.block_until_ready(out)
    assert bool(jnp.all(out == _reference(inp, kernel_gen)))

    # 5) bool input + all-ones kernel: bf16 accumulation path (exact for 0/1 sums)
    inp_bool = jax.random.uniform(k2, (N, C, H, W)) > 0.3
    out = erode_generation_pallas(inp_bool, kernel_ones)
    assert bool(jnp.all(out == _reference(inp_bool.astype(jnp.float32), kernel_ones)))

    # 6) lane-dense W (W % 128 == 0): image-major batch-block layout path
    N2, H2, W2 = 3, 8, 128
    inp2 = (jax.random.uniform(k3, (N2, 1, H2, W2)) > 0.5).astype(jnp.float32)
    out = erode_generation_pallas(inp2, kernel_ones)
    assert bool(jnp.all(out == _reference(inp2, kernel_ones)))
    out = erode_generation_pallas(inp2, kernel_gen)
    jax.block_until_ready(out)
    assert bool(jnp.all(out == _reference(inp2, kernel_gen)))

    print("KERNEL_OK")
</pallas_src>

<mosaic_0001>
module attributes {stable_mosaic.version = 11 : i64} {
  func.func @_erode_kernel(%arg0: i32, %arg1: memref<16x16x128xf32, #tpu.memory_space<vmem>>, %arg2: memref<16x16x128xi32, #tpu.memory_space<vmem>>, %arg3: memref<18x18x128xf32, #tpu.memory_space<vmem>>, %arg4: memref<18x16x128xf32, #tpu.memory_space<vmem>>) attributes {dimension_semantics = [#tpu.dimension_semantics<parallel>], iteration_bounds = array<i64: 1>, scalar_prefetch = 0 : i64, scratch_operands = 2 : i64, tpu.core_type = #tpu.core_type<tc>, window_params = [{transform_indices = @transform_0, window_bounds = array<i64: 16, 16, 128>}, {transform_indices = @transform_1, window_bounds = array<i64: 16, 16, 128>}]} {
    %c0 = arith.constant 0 : index
    %c0_0 = arith.constant 0 : index
    %c0_1 = arith.constant 0 : index
    %0 = vector.load %arg1[%c0, %c0_0, %c0_1] : memref<16x16x128xf32, #tpu.memory_space<vmem>>, vector<16x16x128xf32>
    %c1 = arith.constant 1 : index
    %c1_2 = arith.constant 1 : index
    %c0_3 = arith.constant 0 : index
    %1 = vector.load %arg3[%c1, %c1_2, %c0_3] : memref<18x18x128xf32, #tpu.memory_space<vmem>>, vector<16x16x128xf32>
    tpu.vector_store %arg3[%c1, %c1_2, %c0_3], %0 {strides = array<i32>} : memref<18x18x128xf32, #tpu.memory_space<vmem>>, vector<16x16x128xf32>,
    %cst = arith.constant 0.000000e+00 : f32
    %2 = vector.broadcast %cst : f32 to vector<18x1x128xf32>
    %c0_4 = arith.constant 0 : index
    %c0_5 = arith.constant 0 : index
    %c0_6 = arith.constant 0 : index
    %3 = vector.load %arg3[%c0_4, %c0_5, %c0_6] : memref<18x18x128xf32, #tpu.memory_space<vmem>>, vector<18x1x128xf32>
    tpu.vector_store %arg3[%c0_4, %c0_5, %c0_6], %2 {strides = array<i32>} : memref<18x18x128xf32, #tpu.memory_space<vmem>>, vector<18x1x128xf32>,
    %c0_7 = arith.constant 0 : index
    %c17 = arith.constant 17 : index
    %c0_8 = arith.constant 0 : index
    %4 = vector.load %arg3[%c0_7, %c17, %c0_8] : memref<18x18x128xf32, #tpu.memory_space<vmem>>, vector<18x1x128xf32>
    tpu.vector_store %arg3[%c0_7, %c17, %c0_8], %2 {strides = array<i32>} : memref<18x18x128xf32, #tpu.memory_space<vmem>>, vector<18x1x128xf32>,
    %cst_9 = arith.constant 0.000000e+00 : f32
    %5 = vector.broadcast %cst_9 : f32 to vector<1x18x128xf32>
    %c0_10 = arith.constant 0 : index
    %c0_11 = arith.constant 0 : index
    %c0_12 = arith.constant 0 : index
    %6 = vector.load %arg3[%c0_10, %c0_11, %c0_12] : memref<18x18x128xf32, #tpu.memory_space<vmem>>, vector<1x18x128xf32>
    tpu.vector_store %arg3[%c0_10, %c0_11, %c0_12], %5 {strides = array<i32>} : memref<18x18x128xf32, #tpu.memory_space<vmem>>, vector<1x18x128xf32>,
    %c17_13 = arith.constant 17 : index
    %c0_14 = arith.constant 0 : index
    %c0_15 = arith.constant 0 : index
    %7 = vector.load %arg3[%c17_13, %c0_14, %c0_15] : memref<18x18x128xf32, #tpu.memory_space<vmem>>, vector<1x18x128xf32>
    tpu.vector_store %arg3[%c17_13, %c0_14, %c0_15], %5 {strides = array<i32>} : memref<18x18x128xf32, #tpu.memory_space<vmem>>, vector<1x18x128xf32>,
    %c0_16 = arith.constant 0 : index
    %c0_17 = arith.constant 0 : index
    %c0_18 = arith.constant 0 : index
    %8 = vector.load %arg3[%c0_16, %c0_17, %c0_18] : memref<18x18x128xf32, #tpu.memory_space<vmem>>, vector<18x16x128xf32>
    %c0_19 = arith.constant 0 : index
    %c1_20 = arith.constant 1 : index
    %c0_21 = arith.constant 0 : index
    %9 = vector.load %arg3[%c0_19, %c1_20, %c0_21] : memref<18x18x128xf32, #tpu.memory_space<vmem>>, vector<18x16x128xf32>
    %10 = arith.addf %8, %9 : vector<18x16x128xf32>
    %c0_22 = arith.constant 0 : index
    %c2 = arith.constant 2 : index
    %c0_23 = arith.constant 0 : index
    %11 = vector.load %arg3[%c0_22, %c2, %c0_23] : memref<18x18x128xf32, #tpu.memory_space<vmem>>, vector<18x16x128xf32>
    %12 = arith.addf %10, %11 : vector<18x16x128xf32>
    %c0_24 = arith.constant 0 : index
    %c0_25 = arith.constant 0 : index
    %c0_26 = arith.constant 0 : index
    %13 = vector.load %arg4[%c0_24, %c0_25, %c0_26] : memref<18x16x128xf32, #tpu.memory_space<vmem>>, vector<18x16x128xf32>
    tpu.vector_store %arg4[%c0_24, %c0_25, %c0_26], %12 {strides = array<i32>} : memref<18x16x128xf32, #tpu.memory_space<vmem>>, vector<18x16x128xf32>,
    %c0_27 = arith.constant 0 : index
    %c0_28 = arith.constant 0 : index
    %c0_29 = arith.constant 0 : index
    %14 = vector.load %arg4[%c0_27, %c0_28, %c0_29] : memref<18x16x128xf32, #tpu.memory_space<vmem>>, vector<16x16x128xf32>
    %c1_30 = arith.constant 1 : index
    %c0_31 = arith.constant 0 : index
    %c0_32 = arith.constant 0 : index
    %15 = vector.load %arg4[%c1_30, %c0_31, %c0_32] : memref<18x16x128xf32, #tpu.memory_space<vmem>>, vector<16x16x128xf32>
    %16 = arith.addf %14, %15 : vector<16x16x128xf32>
    %c2_33 = arith.constant 2 : index
    %c0_34 = arith.constant 0 : index
    %c0_35 = arith.constant 0 : index
    %17 = vector.load %arg4[%c2_33, %c0_34, %c0_35] : memref<18x16x128xf32, #tpu.memory_space<vmem>>, vector<16x16x128xf32>
    %18 = arith.addf %16, %17 : vector<16x16x128xf32>
    %cst_36 = arith.constant 9.000000e+00 : f32
    %19 = vector.broadcast %cst_36 : f32 to vector<16x16x128xf32>
    %20 = arith.cmpf oge, %18, %19 : vector<16x16x128xf32>
    %21 = arith.extui %20 : vector<16x16x128xi1> to vector<16x16x128xi32>
    %c0_37 = arith.constant 0 : index
    %c0_38 = arith.constant 0 : index
    %c0_39 = arith.constant 0 : index
    %22 = vector.load %arg2[%c0_37, %c0_38, %c0_39] : memref<16x16x128xi32, #tpu.memory_space<vmem>>, vector<16x16x128xi32>
    tpu.vector_store %arg2[%c0_37, %c0_38, %c0_39], %21 {strides = array<i32>} : memref<16x16x128xi32, #tpu.memory_space<vmem>>, vector<16x16x128xi32>,
    return
  }
  func.func @transform_0(%arg0: i32) -> (i32, i32, i32) {
    %c0_i32 = arith.constant 0 : i32
    %c0_i32_0 = arith.constant 0 : i32
    %c0_i32_1 = arith.constant 0 : i32
    return %c0_i32, %c0_i32_0, %arg0 : i32, i32, i32
  }
  func.func @transform_1(%arg0: i32) -> (i32, i32, i32) {
    %c0_i32 = arith.constant 0 : i32
    %c0_i32_0 = arith.constant 0 : i32
    %c0_i32_1 = arith.constant 0 : i32
    return %c0_i32, %c0_i32_0, %arg0 : i32, i32, i32
  }
}

</mosaic_0001>

<bundles_post_ra>
// kernel: tpu_custom_call.1
= control target key start
LH: loop header
LB: loop body
LE: loop exit
PB: predicated region body
PF: predicated region fallthrough
CT: control target
= control target key end

     0   :  { %6 = vsyncpa [#allocation5], 0  ;;  %s860_s0 = inlined_call_operand.hbm [shape: f32[16,16,128], index: 0, kind: input, shape index: {}]   ;;  %s861_s1 = inlined_call_operand.hbm [shape: s32[16,16,128], index: 1, kind: output, shape index: {}]  }
   0x1   :  { %7 = vsyncpa [#allocation6], 0  ;;  %s672_s6 = smov [#allocation4]  }
   0x2   :  { %s13_s7 = sshll.u32 %s672_s6, 4  ;;  %s14_s7 = int_to_ptr.vmem [resolvable:$true] %s13_s7 }
   0x3   :  { %s636_s8 = scalar_lea.vmem %s14_s7, 4096  ;;  %p641_p1 = scmp.lt.s32.totalorder %s14_s7, %s14_s7 }
   0x4   :  { %p637_p0 = scmp.ne.s32.totalorder %s14_s7, %s636_s8  ;;  %p642_p2 = scmp.lt.s32.totalorder %s636_s8, %s636_s8 }
   0x6   :  { %p643_p3 = por %p642_p2, %p641_p1 }
   0x8   :  { %p644_p4 = pnand %p643_p3, %p637_p0 }
   0xa   :  { %647 = shalt.err (!%p644_p4)
}
   0xb   :  { %s673_s9 = smov 128   ;;  %s674_s10 = smov 8  }
   0xc   :  { %19 = dma.hbm_to_vmem [thread:$0]  %s860_s0, 4096, %s14_s7, [#allocation5], %s673_s9, %s673_s9, %s674_s10  }
   0xd   :  { %668 = dma.done.wait [#allocation5], 4096  }
   0xe   :  { %669 = vsyncadd [#allocation5], 4294963200  ;;  %v675_v0 = vmov 0.0   ;;  %v694_v1 = vld [vmem:[#allocation4] sm:$0xff]  ;;  %v696_v2 = vld [vmem:[#allocation4 + $0x8] sm:$0xff]  ;;  %s677_s0 = smov [#allocation7]  }
   0xf   :  { %89 = vst [vmem:[#allocation2 + $0x18] sm:$0x1] %v675_v0  ;;  %90 = vst [vmem:[#allocation2 + $0x30] sm:$0x1] %v675_v0  ;;  %v698_v3 = vld [vmem:[#allocation4 + $0x10] sm:$0xff]  ;;  %v703_v4 = vld [vmem:[#allocation4 + $0x18] sm:$0xff] }
  0x10   :  { %91 = vst [vmem:[#allocation2 + $0x48] sm:$0x1] %v675_v0  ;;  %92 = vst [vmem:[#allocation2 + $0x60] sm:$0x1] %v675_v0  ;;  %v705_v5 = vld [vmem:[#allocation4 + $0x20] sm:$0xff]  ;;  %v707_v6 = vld [vmem:[#allocation4 + $0x28] sm:$0xff] }
  0x11   :  { %93 = vst [vmem:[#allocation2 + $0x78] sm:$0x1] %v675_v0  ;;  %94 = vst [vmem:[#allocation2 + $0x90] sm:$0x1] %v675_v0  ;;  %v712_v7 = vld [vmem:[#allocation4 + $0x30] sm:$0xff]  ;;  %v714_v8 = vld [vmem:[#allocation4 + $0x38] sm:$0xff] }
  0x12   :  { %95 = vst [vmem:[#allocation2 + $0xa8] sm:$0x1] %v675_v0  ;;  %96 = vst [vmem:[#allocation2 + $0xc0] sm:$0x1] %v675_v0  ;;  %v716_v9 = vld [vmem:[#allocation4 + $0x40] sm:$0xff]  ;;  %v721_v10 = vld [vmem:[#allocation4 + $0x48] sm:$0xff] }
  0x13   :  { %97 = vst [vmem:[#allocation2 + $0xd8] sm:$0x1] %v675_v0  ;;  %98 = vst [vmem:[#allocation2 + $0xf0] sm:$0x1] %v675_v0  ;;  %v723_v11 = vld [vmem:[#allocation4 + $0x50] sm:$0xff]  ;;  %v725_v12 = vld [vmem:[#allocation4 + $0x58] sm:$0xff] }
  0x14   :  { %99 = vst [vmem:[#allocation2 + $0x108] sm:$0x1] %v675_v0  ;;  %100 = vst [vmem:[#allocation2 + $0x120] sm:$0x1] %v675_v0  ;;  %v730_v13 = vld [vmem:[#allocation4 + $0x60] sm:$0xff]  ;;  %v732_v14 = vld [vmem:[#allocation4 + $0x68] sm:$0xff] }
  0x15   :  { %101 = vst [vmem:[#allocation2 + $0x138] sm:$0x1] %v675_v0  ;;  %102 = vst [vmem:[#allocation2 + $0x150] sm:$0x1] %v675_v0  ;;  %v734_v15 = vld [vmem:[#allocation4 + $0x70] sm:$0xff]  ;;  %v739_v16 = vld [vmem:[#allocation4 + $0x78] sm:$0xff] }
  0x16   :  { %103 = vst [vmem:[#allocation2 + $0x168] sm:$0x1] %v675_v0  ;;  %104 = vst [vmem:[#allocation2 + $0x180] sm:$0x1] %v675_v0  ;;  %v741_v17 = vld [vmem:[#allocation4 + $0x80] sm:$0xff]  ;;  %v743_v18 = vld [vmem:[#allocation4 + $0x88] sm:$0xff] }
  0x17   :  { %106 = vst [vmem:[#allocation2 + $0x11] sm:$0x1] %v675_v0  ;;  %107 = vst [vmem:[#allocation2 + $0x29] sm:$0x1] %v675_v0  ;;  %v748_v19 = vld [vmem:[#allocation4 + $0x90] sm:$0xff]  ;;  %v750_v20 = vld [vmem:[#allocation4 + $0x98] sm:$0xff] }
  0x18   :  { %108 = vst [vmem:[#allocation2 + $0x41] sm:$0x1] %v675_v0  ;;  %109 = vst [vmem:[#allocation2 + $0x59] sm:$0x1] %v675_v0  ;;  %v752_v21 = vld [vmem:[#allocation4 + $0xa0] sm:$0xff]  ;;  %v757_v22 = vld [vmem:[#allocation4 + $0xa8] sm:$0xff] }
  0x19   :  { %110 = vst [vmem:[#allocation2 + $0x71] sm:$0x1] %v675_v0  ;;  %111 = vst [vmem:[#allocation2 + $0x89] sm:$0x1] %v675_v0  ;;  %v759_v23 = vld [vmem:[#allocation4 + $0xb0] sm:$0xff]  ;;  %v761_v24 = vld [vmem:[#allocation4 + $0xb8] sm:$0xff] }
  0x1a   :  { %112 = vst [vmem:[#allocation2 + $0xa1] sm:$0x1] %v675_v0  ;;  %113 = vst [vmem:[#allocation2 + $0xb9] sm:$0x1] %v675_v0  ;;  %v766_v25 = vld [vmem:[#allocation4 + $0xc0] sm:$0xff]  ;;  %v768_v26 = vld [vmem:[#allocation4 + $0xc8] sm:$0xff] }
  0x1b   :  { %114 = vst [vmem:[#allocation2 + $0xd1] sm:$0x1] %v675_v0  ;;  %115 = vst [vmem:[#allocation2 + $0xe9] sm:$0x1] %v675_v0  ;;  %v770_v27 = vld [vmem:[#allocation4 + $0xd0] sm:$0xff]  ;;  %v775_v28 = vld [vmem:[#allocation4 + $0xd8] sm:$0xff] }
  0x1c   :  { %116 = vst [vmem:[#allocation2 + $0x101] sm:$0x1] %v675_v0  ;;  %117 = vst [vmem:[#allocation2 + $0x119] sm:$0x1] %v675_v0  ;;  %v777_v29 = vld [vmem:[#allocation4 + $0xe0] sm:$0xff]  ;;  %v779_v30 = vld [vmem:[#allocation4 + $0xe8] sm:$0xff] }
  0x1d   :  { %118 = vst [vmem:[#allocation2 + $0x131] sm:$0x1] %v675_v0  ;;  %119 = vst [vmem:[#allocation2 + $0x149] sm:$0x1] %v675_v0  ;;  %v784_v31 = vld [vmem:[#allocation4 + $0xf0] sm:$0xff]  ;;  %v786_v32 = vld [vmem:[#allocation4 + $0xf8] sm:$0xff] }
  0x1e   :  { %120 = vst [vmem:[#allocation2 + $0x161] sm:$0x1] %v675_v0  ;;  %121 = vst [vmem:[#allocation2 + $0x179] sm:$0x1] %v675_v0  ;;  %s610_s13 = sshll.u32 %s677_s0, 4  ;;  %s611_s13 = int_to_ptr.vmem [resolvable:$true] %s610_s13 }
  0x1f   :  { %122 = vst [vmem:[#allocation2 + $0x191] sm:$0x1] %v675_v0  ;;  %123 = vst [vmem:[#allocation2 + $0x1a9] sm:$0x1] %v675_v0  ;;  %s648_s14 = scalar_lea.vmem %s611_s13, 4096  ;;  %p653_p6 = scmp.lt.s32.totalorder %s611_s13, %s611_s13 }
  0x20   :  { %125 = vst [vmem:[#allocation2 + $0x8] sm:$0xff] %v675_v0  ;;  %129 = vst [vmem:[#allocation2 + $0x1a0] sm:$0xff] %v675_v0  ;;  %p649_p5 = scmp.ne.s32.totalorder %s611_s13, %s648_s14  ;;  %p654_p7 = scmp.lt.s32.totalorder %s648_s14, %s648_s14 }
  0x21   :  { %124 = vst [vmem:[#allocation2] sm:$0xff] %v675_v0  ;;  %126 = vst [vmem:[#allocation2 + $0x10] sm:$0x3] %v675_v0 }
  0x22   :  { %128 = vst [vmem:[#allocation2 + $0x198] sm:$0xff] %v675_v0  ;;  %130 = vst [vmem:[#allocation2 + $0x1a8] sm:$0x3] %v675_v0  ;;  %p655_p8 = por %p654_p7, %p653_p6 }
  0x23   :  { %56 = vst [vmem:[#allocation2 + $0x19] sm:$0xff] %v694_v1  ;;  %57 = vst [vmem:[#allocation2 + $0x21] sm:$0xff] %v696_v2 }
  0x24   :  { %58 = vst [vmem:[#allocation2 + $0x31] sm:$0xff] %v698_v3  ;;  %59 = vst [vmem:[#allocation2 + $0x39] sm:$0xff] %v703_v4  ;;  %p656_p9 = pnand %p655_p8, %p649_p5 }
  0x25   :  { %60 = vst [vmem:[#allocation2 + $0x49] sm:$0xff] %v705_v5  ;;  %61 = vst [vmem:[#allocation2 + $0x51] sm:$0xff] %v707_v6 }
  0x26   :  { %62 = vst [vmem:[#allocation2 + $0x61] sm:$0xff] %v712_v7  ;;  %63 = vst [vmem:[#allocation2 + $0x69] sm:$0xff] %v714_v8 }
  0x27   :  { %64 = vst [vmem:[#allocation2 + $0x79] sm:$0xff] %v716_v9  ;;  %65 = vst [vmem:[#allocation2 + $0x81] sm:$0xff] %v721_v10 }
  0x28   :  { %66 = vst [vmem:[#allocation2 + $0x91] sm:$0xff] %v723_v11  ;;  %67 = vst [vmem:[#allocation2 + $0x99] sm:$0xff] %v725_v12  ;;  %v167_v35 = vld [vmem:[#allocation2 + $0x1] sm:$0xff]  ;;  %v168_v44 = vld [vmem:[#allocation2 + $0x9] sm:$0xff] }
  0x29   :  { %68 = vst [vmem:[#allocation2 + $0xa9] sm:$0xff] %v730_v13  ;;  %69 = vst [vmem:[#allocation2 + $0xb1] sm:$0xff] %v732_v14  ;;  %v239_v37 = vld [vmem:[#allocation2 + $0x2] sm:$0xff]  ;;  %v240_v46 = vld [vmem:[#allocation2 + $0xa] sm:$0xff] }
  0x2a   :  { %70 = vst [vmem:[#allocation2 + $0xc1] sm:$0xff] %v734_v15  ;;  %71 = vst [vmem:[#allocation2 + $0xc9] sm:$0xff] %v739_v16  ;;  %v133_v33 = vld [vmem:[#allocation2 + $0x18] sm:$0xff]  ;;  %v134_v41 = vld [vmem:[#allocation2 + $0x20] sm:$0xff]  ;;  %v275_v47 = vadd.f32 %v239_v37, %v167_v35  ;;  %v276_v57 = vadd.f32 %v240_v46, %v168_v44 }
  0x2b   :  { %72 = vst [vmem:[#allocation2 + $0xd9] sm:$0xff] %v741_v17  ;;  %73 = vst [vmem:[#allocation2 + $0xe1] sm:$0xff] %v743_v18  ;;  %v135_v34 = vld [vmem:[#allocation2 + $0x30] sm:$0xff]  ;;  %v205_v36 = vadd.f32 %v133_v33, %v694_v1  ;;  %v241_v39 = vld [vmem:[#allocation2 + $0x1a] sm:$0xff]  ;;  %v206_v45 = vadd.f32 %v134_v41, %v696_v2 }
  0x2c   :  { %74 = vst [vmem:[#allocation2 + $0xf1] sm:$0xff] %v748_v19  ;;  %75 = vst [vmem:[#allocation2 + $0xf9] sm:$0xff] %v750_v20  ;;  %v207_v38 = vadd.f32 %v135_v34, %v698_v3  ;;  %v243_v40 = vld [vmem:[#allocation2 + $0x32] sm:$0xff]  ;;  %v242_v50 = vld [vmem:[#allocation2 + $0x22] sm:$0xff] }
  0x2d   :  { %76 = vst [vmem:[#allocation2 + $0x109] sm:$0xff] %v752_v21  ;;  %77 = vst [vmem:[#allocation2 + $0x111] sm:$0xff] %v757_v22  ;;  %v277_v42 = vadd.f32 %v241_v39, %v205_v36  ;;  %v136_v43 = vld [vmem:[#allocation2 + $0x38] sm:$0xff]  ;;  %v137_v51 = vld [vmem:[#allocation2 + $0x48] sm:$0xff]  ;;  %v278_v53 = vadd.f32 %v242_v50, %v206_v45 }
  0x2e   :  { %78 = vst [vmem:[#allocation2 + $0x121] sm:$0xff] %v759_v23  ;;  %79 = vst [vmem:[#allocation2 + $0x129] sm:$0xff] %v761_v24  ;;  %v279_v48 = vadd.f32 %v243_v40, %v207_v38  ;;  %v208_v49 = vadd.f32 %v136_v43, %v703_v4  ;;  %v244_v52 = vld [vmem:[#allocation2 + $0x3a] sm:$0xff]  ;;  %v209_v54 = vadd.f32 %v137_v51, %v705_v5  ;;  %v138_v55 = vld [vmem:[#allocation2 + $0x50] sm:$0xff] }
  0x2f   :  { %80 = vst [vmem:[#allocation2 + $0x139] sm:$0xff] %v766_v25  ;;  %81 = vst [vmem:[#allocation2 + $0x141] sm:$0xff] %v768_v26  ;;  %v412_v56 = vadd.f32 %v277_v42, %v275_v47  ;;  %v245_v59 = vld [vmem:[#allocation2 + $0x4a] sm:$0xff]  ;;  %v139_v61 = vld [vmem:[#allocation2 + $0x60] sm:$0xff]  ;;  %v210_v0 = vadd.f32 %v138_v55, %v707_v6  ;;  %v413_v33 = vadd.f32 %v278_v53, %v276_v57 }
  0x30   :  { %82 = vst [vmem:[#allocation2 + $0x151] sm:$0xff] %v770_v27  ;;  %83 = vst [vmem:[#allocation2 + $0x159] sm:$0xff] %v775_v28  ;;  %v280_v58 = vadd.f32 %v244_v52, %v208_v49  ;;  %v414_v60 = vadd.f32 %v279_v48, %v277_v42  ;;  %v140_v62 = vld [vmem:[#allocation2 + $0x68] sm:$0xff]  ;;  %v281_v63 = vadd.f32 %v245_v59, %v209_v54  ;;  %v141_v3 = vld [vmem:[#allocation2 + $0x78] sm:$0xff] }
  0x31   :  { %84 = vst [vmem:[#allocation2 + $0x169] sm:$0xff] %v777_v29  ;;  %85 = vst [vmem:[#allocation2 + $0x171] sm:$0xff] %v779_v30  ;;  %v211_v1 = vadd.f32 %v139_v61, %v712_v7  ;;  %v212_v2 = vadd.f32 %v140_v62, %v714_v8  ;;  %v477_v4 = vadd.f32 %v412_v56, %v279_v48  ;;  %v246_v34 = vld [vmem:[#allocation2 + $0x52] sm:$0xff]  ;;  %v247_v35 = vld [vmem:[#allocation2 + $0x62] sm:$0xff]  ;;  %v676_v8 = vmov 0  }
  0x32   :  { %86 = vst [vmem:[#allocation2 + $0x181] sm:$0xff] %v784_v31  ;;  %87 = vst [vmem:[#allocation2 + $0x189] sm:$0xff] %v786_v32  ;;  %v415_v5 = vadd.f32 %v280_v58, %v278_v53  ;;  %v213_v36 = vadd.f32 %v141_v3, %v716_v9  ;;  %v479_v37 = vadd.f32 %v414_v60, %v281_v63  ;;  %v248_v41 = vld [vmem:[#allocation2 + $0x6a] sm:$0xff]  ;;  %v249_v42 = vld [vmem:[#allocation2 + $0x7a] sm:$0xff] }
  0x33   :  { %v282_v38 = vadd.f32 %v246_v34, %v210_v0  ;;  %v283_v39 = vadd.f32 %v247_v35, %v211_v1  ;;  %v416_v40 = vadd.f32 %v281_v63, %v279_v48  ;;  %vm509_vm0 = vcmp.ge.f32.partialorder %v477_v4, 9.0  ;;  %v142_v44 = vld [vmem:[#allocation2 + $0x80] sm:$0xff]  ;;  %v143_v48 = vld [vmem:[#allocation2 + $0x90] sm:$0xff]  ;;  %v144_v53 = vld [vmem:[#allocation2 + $0x98] sm:$0xff] }
  0x34   :  { %v478_v6 = vadd.f32 %v413_v33, %v280_v58  ;;  %v284_v43 = vadd.f32 %v248_v41, %v212_v2  ;;  %v285_v7 = vadd.f32 %v249_v42, %v213_v36  ;;  %v541_v45 = vsel %vm509_vm0, 1, %v676_v8  ;;  %v145_v54 = vld [vmem:[#allocation2 + $0xa8] sm:$0xff]  ;;  %v146_v0 = vld [vmem:[#allocation2 + $0xb0] sm:$0xff]  ;;  %v147_v3 = vld [vmem:[#allocation2 + $0xc0] sm:$0xff] }
  0x35   :  { %vm511_vm1 = vcmp.ge.f32.partialorder %v479_v37, 9.0  ;;  %v480_v46 = vadd.f32 %v415_v5, %v282_v38  ;;  %v481_v47 = vadd.f32 %v416_v40, %v283_v39  ;;  %573 = vst [vmem:[#allocation7] sm:$0xff] %v541_v45  ;;  %v417_v49 = vadd.f32 %v282_v38, %v280_v58  ;;  %v250_v60 = vld [vmem:[#allocation2 + $0x82] sm:$0xff]  ;;  %v252_v35 = vld [vmem:[#allocation2 + $0x9a] sm:$0xff]  ;;  %v253_v36 = vld [vmem:[#allocation2 + $0xaa] sm:$0xff] }
  0x36   :  { %vm510_vm2 = vcmp.ge.f32.partialorder %v478_v6, 9.0  ;;  %v543_v9 = vsel %vm511_vm1, 1, %v676_v8  ;;  %v418_v50 = vadd.f32 %v283_v39, %v281_v63  ;;  %v214_v52 = vadd.f32 %v142_v44, %v721_v10  ;;  %v251_v10 = vld [vmem:[#allocation2 + $0x92] sm:$0xff]  ;;  %v148_v42 = vld [vmem:[#allocation2 + $0xc8] sm:$0xff] }
  0x37   :  { %v542_v51 = vsel %vm510_vm2, 1, %v676_v8  ;;  %575 = vst [vmem:[#allocation7 + $0x10] sm:$0xff] %v543_v9  ;;  %vm512_vm3 = vcmp.ge.f32.partialorder %v480_v46, 9.0  ;;  %vm513_vm4 = vcmp.ge.f32.partialorder %v481_v47, 9.0  ;;  %v482_v57 = vadd.f32 %v417_v49, %v284_v43  ;;  %v255_v47 = vld [vmem:[#allocation2 + $0xc2] sm:$0xff] }
  0x38   :  { %574 = vst [vmem:[#allocation7 + $0x8] sm:$0xff] %v542_v51  ;;  %v544_v55 = vsel %vm512_vm3, 1, %v676_v8  ;;  %v545_v56 = vsel %vm513_vm4, 1, %v676_v8  ;;  %v483_v59 = vadd.f32 %v418_v50, %v285_v7  ;;  %v286_v58 = vadd.f32 %v250_v60, %v214_v52  ;;  %v149_v50 = vld [vmem:[#allocation2 + $0xd8] sm:$0xff] }
  0x39   :  { %576 = vst [vmem:[#allocation7 + $0x18] sm:$0xff] %v544_v55  ;;  %577 = vst [vmem:[#allocation7 + $0x20] sm:$0xff] %v545_v56  ;;  %v419_v61 = vadd.f32 %v284_v43, %v282_v38  ;;  %v215_v62 = vadd.f32 %v143_v48, %v723_v11  ;;  %v420_v63 = vadd.f32 %v285_v7, %v283_v39  ;;  %vm514_vm5 = vcmp.ge.f32.partialorder %v482_v57, 9.0  ;;  %v152_v60 = vld [vmem:[#allocation2 + $0xf8] sm:$0xff] }
  0x3a   :  { %vm515_vm6 = vcmp.ge.f32.partialorder %v483_v59, 9.0  ;;  %v216_v1 = vadd.f32 %v144_v53, %v725_v12  ;;  %v217_v2 = vadd.f32 %v145_v54, %v730_v13  ;;  %v546_v4 = vsel %vm514_vm5, 1, %v676_v8  ;;  %v254_v13 = vld [vmem:[#allocation2 + $0xb2] sm:$0xff]  ;;  %v256_v53 = vld [vmem:[#allocation2 + $0xca] sm:$0xff] }
  0x3b   :  { %v547_v33 = vsel %vm515_vm6, 1, %v676_v8  ;;  %v484_v34 = vadd.f32 %v419_v61, %v286_v58  ;;  %v287_v5 = vadd.f32 %v251_v10, %v215_v62  ;;  %578 = vst [vmem:[#allocation7 + $0x28] sm:$0xff] %v546_v4  ;;  %v421_v37 = vadd.f32 %v286_v58, %v284_v43  ;;  %v151_v59 = vld [vmem:[#allocation2 + $0xf0] sm:$0xff]  ;;  %v257_v61 = vld [vmem:[#allocation2 + $0xda] sm:$0xff] }
  0x3c   :  { %579 = vst [vmem:[#allocation7 + $0x30] sm:$0xff] %v547_v33  ;;  %v288_v11 = vadd.f32 %v252_v35, %v216_v1  ;;  %v289_v38 = vadd.f32 %v253_v36, %v217_v2  ;;  %v218_v39 = vadd.f32 %v146_v0, %v732_v14  ;;  %v219_v41 = vadd.f32 %v147_v3, %v734_v15  ;;  %v150_v15 = vld [vmem:[#allocation2 + $0xe0] sm:$0xff]  ;;  %v154_v0 = vld [vmem:[#allocation2 + $0x110] sm:$0xff] }
  0x3d   :  { %vm516_vm7 = vcmp.ge.f32.partialorder %v484_v34, 9.0  ;;  %v485_v12 = vadd.f32 %v420_v63, %v287_v5  ;;  %v422_v40 = vadd.f32 %v287_v5, %v285_v7  ;;  %v220_v48 = vadd.f32 %v148_v42, %v739_v16  ;;  %v258_v3 = vld [vmem:[#allocation2 + $0xe2] sm:$0xff]  ;;  %v259_v36 = vld [vmem:[#allocation2 + $0xf2] sm:$0xff] }
  0x3e   :  { %v548_v6 = vsel %vm516_vm7, 1, %v676_v8  ;;  %v486_v44 = vadd.f32 %v421_v37, %v288_v11  ;;  %v290_v45 = vadd.f32 %v254_v13, %v218_v39  ;;  %v423_v46 = vadd.f32 %v288_v11, %v286_v58  ;;  %v153_v58 = vld [vmem:[#allocation2 + $0x108] sm:$0xff]  ;;  %v155_v42 = vld [vmem:[#allocation2 + $0x120] sm:$0xff] }
  0x3f   :  { %580 = vst [vmem:[#allocation7 + $0x38] sm:$0xff] %v548_v6  ;;  %vm517_vm8 = vcmp.ge.f32.partialorder %v485_v12, 9.0  ;;  %v487_v9 = vadd.f32 %v422_v40, %v289_v38  ;;  %v291_v43 = vadd.f32 %v255_v47, %v219_v41  ;;  %v424_v49 = vadd.f32 %v289_v38, %v287_v5  ;;  %v261_v13 = vld [vmem:[#allocation2 + $0x10a] sm:$0xff]  ;;  %v262_v41 = vld [vmem:[#allocation2 + $0x112] sm:$0xff] }
  0x40   :  { %v549_v14 = vsel %vm517_vm8, 1, %v676_v8  ;;  %vm518_vm9 = vcmp.ge.f32.partialorder %v486_v44, 9.0  ;;  %v488_v7 = vadd.f32 %v423_v46, %v290_v45  ;;  %v425_v54 = vadd.f32 %v290_v45, %v288_v11  ;;  %v260_v11 = vld [vmem:[#allocation2 + $0xfa] sm:$0xff]  ;;  %v156_v6 = vld [vmem:[#allocation2 + $0x128] sm:$0xff] }
  0x41   :  { %581 = vst [vmem:[#allocation7 + $0x40] sm:$0xff] %v549_v14  ;;  %v550_v51 = vsel %vm518_vm9, 1, %v676_v8  ;;  %vm519_vm10 = vcmp.ge.f32.partialorder %v487_v9, 9.0  ;;  %v489_v52 = vadd.f32 %v424_v49, %v291_v43  ;;  %v292_v56 = vadd.f32 %v256_v53, %v220_v48  ;;  %v157_v48 = vld [vmem:[#allocation2 + $0x138] sm:$0xff]  ;;  %v264_v53 = vld [vmem:[#allocation2 + $0x12a] sm:$0xff] }
  0x42   :  { %582 = vst [vmem:[#allocation7 + $0x48] sm:$0xff] %v550_v51  ;;  %v551_v55 = vsel %vm519_vm10, 1, %v676_v8  ;;  %vm520_vm11 = vcmp.ge.f32.partialorder %v488_v7, 9.0  ;;  %v221_v57 = vadd.f32 %v149_v50, %v741_v17  ;;  %v426_v62 = vadd.f32 %v291_v43, %v289_v38  ;;  %v263_v50 = vld [vmem:[#allocation2 + $0x122] sm:$0xff] }
  0x43   :  { %583 = vst [vmem:[#allocation7 + $0x50] sm:$0xff] %v551_v55  ;;  %v552_v16 = vsel %vm520_vm11, 1, %v676_v8  ;;  %vm521_vm12 = vcmp.ge.f32.partialorder %v489_v52, 9.0  ;;  %v222_v63 = vadd.f32 %v150_v15, %v743_v18  ;;  %v490_v1 = vadd.f32 %v425_v54, %v292_v56  ;;  %v158_v54 = vld [vmem:[#allocation2 + $0x140] sm:$0xff] }
  0x44   :  { %584 = vst [vmem:[#allocation7 + $0x58] sm:$0xff] %v552_v16  ;;  %v553_v10 = vsel %vm521_vm12, 1, %v676_v8  ;;  %v293_v2 = vadd.f32 %v257_v61, %v221_v57  ;;  %v427_v4 = vadd.f32 %v292_v56, %v290_v45  ;;  %v223_v33 = vadd.f32 %v151_v59, %v748_v19  ;;  %v159_v57 = vld [vmem:[#allocation2 + $0x150] sm:$0xff] }
  0x45   :  { %585 = vst [vmem:[#allocation7 + $0x60] sm:$0xff] %v553_v10  ;;  %v294_v17 = vadd.f32 %v258_v3, %v222_v63  ;;  %v224_v34 = vadd.f32 %v152_v60, %v750_v20  ;;  %v225_v5 = vadd.f32 %v153_v58, %v752_v21  ;;  %vm522_vm13 = vcmp.ge.f32.partialorder %v490_v1, 9.0  ;;  %v160_v58 = vld [vmem:[#allocation2 + $0x158] sm:$0xff]  ;;  %v266_v1 = vld [vmem:[#allocation2 + $0x142] sm:$0xff] }
  0x46   :  { %v491_v35 = vadd.f32 %v426_v62, %v293_v2  ;;  %v428_v18 = vadd.f32 %v293_v2, %v291_v43  ;;  %v226_v37 = vadd.f32 %v154_v0, %v757_v22  ;;  %v554_v38 = vsel %vm522_vm13, 1, %v676_v8  ;;  %v265_v62 = vld [vmem:[#allocation2 + $0x13a] sm:$0xff] }
  0x47   :  { %v492_v39 = vadd.f32 %v427_v4, %v294_v17  ;;  %v295_v12 = vadd.f32 %v259_v36, %v223_v33  ;;  %v296_v40 = vadd.f32 %v260_v11, %v224_v34  ;;  %586 = vst [vmem:[#allocation7 + $0x68] sm:$0xff] %v554_v38  ;;  %v429_v19 = vadd.f32 %v294_v17, %v292_v56  ;;  %v161_v4 = vld [vmem:[#allocation2 + $0x168] sm:$0xff]  ;;  %v267_v33 = vld [vmem:[#allocation2 + $0x152] sm:$0xff]  ;;  %v268_v11 = vld [vmem:[#allocation2 + $0x15a] sm:$0xff] }
  0x48   :  { %vm523_vm14 = vcmp.ge.f32.partialorder %v491_v35, 9.0  ;;  %v297_v20 = vadd.f32 %v261_v13, %v225_v5  ;;  %v298_v21 = vadd.f32 %v262_v41, %v226_v37  ;;  %v227_v43 = vadd.f32 %v155_v42, %v759_v23  ;;  %v162_v5 = vld [vmem:[#allocation2 + $0x170] sm:$0xff]  ;;  %v163_v41 = vld [vmem:[#allocation2 + $0x180] sm:$0xff] }
  0x49   :  { %v555_v44 = vsel %vm523_vm14, 1, %v676_v8  ;;  %vm524_vm15 = vcmp.ge.f32.partialorder %v492_v39, 9.0  ;;  %v493_v45 = vadd.f32 %v428_v18, %v295_v12  ;;  %v430_v46 = vadd.f32 %v295_v12, %v293_v2 }
  0x4a   :  { %587 = vst [vmem:[#allocation7 + $0x70] sm:$0xff] %v555_v44  ;;  %v556_v22 = vsel %vm524_vm15, 1, %v676_v8  ;;  %v494_v47 = vadd.f32 %v429_v19, %v296_v40  ;;  %v431_v9 = vadd.f32 %v296_v40, %v294_v17  ;;  %v432_v14 = vadd.f32 %v297_v20, %v295_v12 }
  0x4b   :  { %588 = vst [vmem:[#allocation7 + $0x78] sm:$0xff] %v556_v22  ;;  %vm525_vm0 = vcmp.ge.f32.partialorder %v493_v45, 9.0  ;;  %v495_v49 = vadd.f32 %v430_v46, %v297_v20  ;;  %v228_v7 = vadd.f32 %v156_v6, %v761_v24  ;;  %v299_v52 = vadd.f32 %v263_v50, %v227_v43  ;;  %v164_v6 = vld [vmem:[#allocation2 + $0x188] sm:$0xff]  ;;  %v201_v46 = vld [vmem:[#allocation2 + $0x199] sm:$0xff] }
  0x4c   :  { %v557_v15 = vsel %vm525_vm0, 1, %v676_v8  ;;  %vm526_vm1 = vcmp.ge.f32.partialorder %v494_v47, 9.0  ;;  %v496_v51 = vadd.f32 %v431_v9, %v298_v21  ;;  %v433_v56 = vadd.f32 %v298_v21, %v296_v40  ;;  %v269_v40 = vld [vmem:[#allocation2 + $0x16a] sm:$0xff]  ;;  %v202_v9 = vld [vmem:[#allocation2 + $0x1a1] sm:$0xff] }
  0x4d   :  { %589 = vst [vmem:[#allocation7 + $0x80] sm:$0xff] %v557_v15  ;;  %v558_v55 = vsel %vm526_vm1, 1, %v676_v8  ;;  %vm527_vm2 = vcmp.ge.f32.partialorder %v495_v49, 9.0  ;;  %v300_v23 = vadd.f32 %v264_v53, %v228_v7  ;;  %v497_v24 = vadd.f32 %v432_v14, %v299_v52  ;;  %v271_v50 = vld [vmem:[#allocation2 + $0x182] sm:$0xff] }
  0x4e   :  { %590 = vst [vmem:[#allocation7 + $0x88] sm:$0xff] %v558_v55  ;;  %v559_v59 = vsel %vm527_vm2, 1, %v676_v8  ;;  %vm528_vm3 = vcmp.ge.f32.partialorder %v496_v51, 9.0  ;;  %v229_v60 = vadd.f32 %v157_v48, %v766_v25  ;;  %v434_v63 = vadd.f32 %v299_v52, %v297_v20  ;;  %v273_v48 = vld [vmem:[#allocation2 + $0x19a] sm:$0xff]  ;;  %v272_v51 = vld [vmem:[#allocation2 + $0x18a] sm:$0xff]  ;;  %v274_v53 = vld [vmem:[#allocation2 + $0x1a2] sm:$0xff] }
  0x4f   :  { %591 = vst [vmem:[#allocation7 + $0x90] sm:$0xff] %v559_v59  ;;  %v560_v16 = vsel %vm528_vm3, 1, %v676_v8  ;;  %v498_v61 = vadd.f32 %v433_v56, %v300_v23  ;;  %v230_v0 = vadd.f32 %v158_v54, %v768_v26  ;;  %vm529_vm4 = vcmp.ge.f32.partialorder %v497_v24, 9.0 }
  0x50   :  { %592 = vst [vmem:[#allocation7 + $0x98] sm:$0xff] %v560_v16  ;;  %v301_v10 = vadd.f32 %v265_v62, %v229_v60  ;;  %v435_v2 = vadd.f32 %v300_v23, %v298_v21  ;;  %v231_v3 = vadd.f32 %v159_v57, %v770_v27  ;;  %v561_v17 = vsel %vm529_vm4, 1, %v676_v8  ;;  %v270_v21 = vld [vmem:[#allocation2 + $0x172] sm:$0xff] }
  0x51   :  { %vm530_vm5 = vcmp.ge.f32.partialorder %v498_v61, 9.0  ;;  %v302_v25 = vadd.f32 %v266_v1, %v230_v0  ;;  %v232_v34 = vadd.f32 %v160_v58, %v775_v28  ;;  %593 = vst [vmem:[#allocation7 + $0xa0] sm:$0xff] %v561_v17  ;;  %v233_v39 = vadd.f32 %v161_v4, %v777_v29 }
  0x52   :  { %v562_v35 = vsel %vm530_vm5, 1, %v676_v8  ;;  %v499_v26 = vadd.f32 %v434_v63, %v301_v10  ;;  %v303_v36 = vadd.f32 %v267_v33, %v231_v3  ;;  %v436_v18 = vadd.f32 %v301_v10, %v299_v52 }
  0x53   :  { %594 = vst [vmem:[#allocation7 + $0xa8] sm:$0xff] %v562_v35  ;;  %v500_v37 = vadd.f32 %v435_v2, %v302_v25  ;;  %v304_v38 = vadd.f32 %v268_v11, %v232_v34  ;;  %v437_v27 = vadd.f32 %v302_v25, %v300_v23  ;;  %v234_v28 = vadd.f32 %v162_v5, %v779_v30 }
  0x54   :  { %vm531_vm6 = vcmp.ge.f32.partialorder %v499_v26, 9.0  ;;  %v501_v12 = vadd.f32 %v436_v18, %v303_v36  ;;  %v438_v13 = vadd.f32 %v303_v36, %v301_v10  ;;  %v305_v20 = vadd.f32 %v269_v40, %v233_v39 }
  0x55   :  { %v563_v42 = vsel %vm531_vm6, 1, %v676_v8  ;;  %vm532_vm7 = vcmp.ge.f32.partialorder %v500_v37, 9.0  ;;  %v502_v19 = vadd.f32 %v437_v27, %v304_v38  ;;  %v306_v45 = vadd.f32 %v270_v21, %v234_v28 }
  0x56   :  { %595 = vst [vmem:[#allocation7 + $0xb0] sm:$0xff] %v563_v42  ;;  %v564_v44 = vsel %vm532_vm7, 1, %v676_v8  ;;  %vm533_vm8 = vcmp.ge.f32.partialorder %v501_v12, 9.0  ;;  %v439_v29 = vadd.f32 %v304_v38, %v302_v25  ;;  %v503_v30 = vadd.f32 %v438_v13, %v305_v20 }
  0x57   :  { %596 = vst [vmem:[#allocation7 + $0xb8] sm:$0xff] %v564_v44  ;;  %v565_v22 = vsel %vm533_vm8, 1, %v676_v8  ;;  %vm534_vm9 = vcmp.ge.f32.partialorder %v502_v19, 9.0  ;;  %v235_v47 = vadd.f32 %v163_v41, %v784_v31  ;;  %v440_v14 = vadd.f32 %v305_v20, %v303_v36 }
  0x58   :  { %597 = vst [vmem:[#allocation7 + $0xc0] sm:$0xff] %v565_v22  ;;  %v566_v43 = vsel %vm534_vm9, 1, %v676_v8  ;;  %v504_v49 = vadd.f32 %v439_v29, %v306_v45  ;;  %v236_v7 = vadd.f32 %v164_v6, %v786_v32  ;;  %vm535_vm10 = vcmp.ge.f32.partialorder %v503_v30, 9.0 }
  0x59   :  { %598 = vst [vmem:[#allocation7 + $0xc8] sm:$0xff] %v566_v43  ;;  %v307_v15 = vadd.f32 %v271_v50, %v235_v47  ;;  %v441_v52 = vadd.f32 %v306_v45, %v304_v38  ;;  %v567_v54 = vsel %vm535_vm10, 1, %v676_v8  ;;  %v309_v56 = vadd.f32 %v273_v48, %v201_v46 }
  0x5a   :  { %vm536_vm11 = vcmp.ge.f32.partialorder %v504_v49, 9.0  ;;  %v308_v31 = vadd.f32 %v272_v51, %v236_v7  ;;  %599 = vst [vmem:[#allocation7 + $0xd0] sm:$0xff] %v567_v54  ;;  %v310_v32 = vadd.f32 %v274_v53, %v202_v9 }
  0x5b   :  { %v568_v55 = vsel %vm536_vm11, 1, %v676_v8  ;;  %v505_v23 = vadd.f32 %v440_v14, %v307_v15  ;;  %v442_v57 = vadd.f32 %v307_v15, %v305_v20 }
  0x5c   :  { %600 = vst [vmem:[#allocation7 + $0xd8] sm:$0xff] %v568_v55  ;;  %v506_v59 = vadd.f32 %v441_v52, %v308_v31  ;;  %v443_v24 = vadd.f32 %v308_v31, %v306_v45 }
  0x5d   :  { %vm537_vm12 = vcmp.ge.f32.partialorder %v505_v23, 9.0  ;;  %v507_v60 = vadd.f32 %v442_v57, %v309_v56 }
  0x5e   :  { %v569_v58 = vsel %vm537_vm12, 1, %v676_v8  ;;  %vm538_vm13 = vcmp.ge.f32.partialorder %v506_v59, 9.0  ;;  %v508_v16 = vadd.f32 %v443_v24, %v310_v32 }
  0x5f   :  { %601 = vst [vmem:[#allocation7 + $0xe0] sm:$0xff] %v569_v58  ;;  %v570_v61 = vsel %vm538_vm13, 1, %v676_v8  ;;  %vm539_vm14 = vcmp.ge.f32.partialorder %v507_v60, 9.0 }
  0x60   :  { %602 = vst [vmem:[#allocation7 + $0xe8] sm:$0xff] %v570_v61  ;;  %v571_v62 = vsel %vm539_vm14, 1, %v676_v8  ;;  %vm540_vm15 = vcmp.ge.f32.partialorder %v508_v16, 9.0 }
  0x61   :  { %603 = vst [vmem:[#allocation7 + $0xf0] sm:$0xff] %v571_v62  ;;  %v572_v63 = vsel %vm540_vm15, 1, %v676_v8 }
  0x62   :  { %604 = vst [vmem:[#allocation7 + $0xf8] sm:$0xff] %v572_v63 }
  0x63   :  { %659 = shalt.err (!%p656_p9)
}
  0x64   :  { %616 = dma.vmem_to_hbm [thread:$0]  %s611_s13, 4096, %s861_s1, [#allocation6], %s673_s9, %s673_s9, %s674_s10  }
  0x65   :  { %670 = dma.done.wait [#allocation6], 4096  }
  0x66   :  { %671 = vsyncadd [#allocation6], 4294963200 }
  0x67   :  { %620 = vsyncpa [#allocation5], 1 }
  0x68   :  { %621 = vsyncpa [#allocation6], 1 }

</bundles_post_ra>
